<compile_context>
chip_gen: v5e
topology: v5e:2x2
jax: 0.10.0
libtpu: 0.0.40
codegen_flags: <defaults>
</compile_context>

<pallas_src>
import jax
import jax.numpy as jnp
from jax.experimental import pallas as pl
from jax.experimental.pallas import tpu as pltpu


def _round_up(x, m):
    return ((x + m - 1) // m) * m


def _pick_tile(hw, c, itemsize, *, max_tile_bytes=2 << 20, max_tile=2048):
    """Choose a lane tile (multiple of 128) and the padded spatial extent."""
    hw_pad128 = _round_up(hw, 128)
    # Largest lane tile whose (C, TILE) input slab fits the per-buffer budget.
    cap = max(128, (max_tile_bytes // max(c * itemsize, 1)) // 128 * 128)
    cap = min(cap, max_tile, hw_pad128)
    # Prefer a tile that divides the 128-padded extent (no edge padding),
    # as long as it is not much smaller than the budgeted cap.
    best = None
    for t in range(cap, 0, -128):
        if hw_pad128 % t == 0:
            best = t
            break
    if best is not None and best * 2 >= cap:
        return best, hw_pad128
    return cap, _round_up(hw_pad128, cap)


def _to_map_kernel(w_ref, b_ref, x_ref, o_ref):
    # w_ref: (1, C)        1x1 conv weight (out_channels = 1), input dtype
    # b_ref: (1,)          f32 bias scalar in SMEM
    # x_ref: (C, TILE_HW)  one batch element, one lane-dense spatial tile
    # o_ref: (1, TILE_HW)
    # Channel reduction on the MXU in the native input dtype, f32 accumulate.
    acc = jnp.dot(w_ref[...], x_ref[...],
                  preferred_element_type=jnp.float32)        # (1, TILE_HW) f32
    o_ref[...] = jax.nn.sigmoid(acc + b_ref[0]).astype(o_ref.dtype)


def to_map_forward(feature, weight, bias):
    """sigmoid(conv1x1(feature)) with feature (N, C, H, W) -> (N, 1, H, W)."""
    N, C, H, W = feature.shape
    HW = H * W
    itemsize = jnp.dtype(feature.dtype).itemsize

    TILE_HW, HW_pad = _pick_tile(HW, C, itemsize)
    num_hw_tiles = HW_pad // TILE_HW

    # NCHW -> (N, C, HW); pad the lane axis only when the spatial extent is
    # ragged (the pad is a full-array copy, so it is skipped whenever HW is
    # already tile-aligned).
    x = feature.reshape(N, C, HW)
    if HW_pad != HW:
        x = jnp.pad(x, ((0, 0), (0, 0), (0, HW_pad - HW)))

    # PyTorch weight (1, C, 1, 1) -> (1, C), kept in the feature dtype so the
    # MXU consumes bf16/f32 natively.  Bias -> single f32 scalar for SMEM.
    w = weight.reshape(1, C).astype(feature.dtype)
    b = bias.reshape(1).astype(jnp.float32)

    out = pl.pallas_call(
        _to_map_kernel,
        out_shape=jax.ShapeDtypeStruct((N, 1, HW_pad), feature.dtype),
        grid=(N, num_hw_tiles),
        in_specs=[
            pl.BlockSpec((1, C), lambda n, t: (0, 0)),                 # weight
            pl.BlockSpec(memory_space=pltpu.SMEM),                     # bias
            pl.BlockSpec((None, C, TILE_HW), lambda n, t: (n, 0, t)),  # x
        ],
        out_specs=pl.BlockSpec((None, 1, TILE_HW), lambda n, t: (n, 0, t)),
        compiler_params=pltpu.CompilerParams(
            dimension_semantics=("parallel", "parallel")),
    )(w, b, x)

    if HW_pad != HW:
        out = out[:, :, :HW]
    return out.reshape(N, 1, H, W)


def _reference(feature, weight, bias):
    # Pure-JAX reference of Conv2d(C->1, k=1) + sigmoid.
    w = weight.reshape(1, -1, 1, 1)                      # (1, C, 1, 1)
    y = jnp.sum(feature.astype(jnp.float32) * w.astype(jnp.float32),
                axis=1, keepdims=True) + bias.reshape(1, 1, 1, 1)
    return jax.nn.sigmoid(y).astype(feature.dtype)


if __name__ == "__main__":
    N, C, H, W = 2, 4, 16, 16

    key = jax.random.PRNGKey(0)
    k_x, k_w, k_b = jax.random.split(key, 3)

    feature = jax.random.normal(k_x, (N, C, H, W), dtype=jnp.float32)
    # Deterministic init mimicking PyTorch Conv2d default (uniform +-1/sqrt(C)).
    bound = 1.0 / jnp.sqrt(jnp.float32(C))
    weight = jax.random.uniform(k_w, (1, C, 1, 1), jnp.float32, -bound, bound)
    bias = jax.random.uniform(k_b, (1,), jnp.float32, -bound, bound)

    out = to_map_forward(feature, weight, bias)
    out = jax.block_until_ready(out)

    ref = _reference(feature, weight, bias)
    assert out.shape == (N, 1, H, W)
    assert jnp.allclose(out, ref, atol=1e-5, rtol=1e-5)

    # Ragged spatial size (padding path, non multiple of 128).
    f2 = jax.random.normal(k_x, (1, C, 7, 7), dtype=jnp.float32)
    out2 = jax.block_until_ready(to_map_forward(f2, weight, bias))
    ref2 = _reference(f2, weight, bias)
    assert out2.shape == (1, 1, 7, 7)
    assert jnp.allclose(out2, ref2, atol=1e-5, rtol=1e-5)

    print("KERNEL_OK")
</pallas_src>

<mosaic_0001>
module attributes {stable_mosaic.version = 11 : i64} {
  func.func @_to_map_kernel(%arg0: i32, %arg1: i32, %arg2: memref<1x4xf32, #tpu.memory_space<vmem>>, %arg3: memref<1xf32, #tpu.memory_space<smem>>, %arg4: memref<1x4x256xf32, #tpu.memory_space<vmem>>, %arg5: memref<1x1x256xf32, #tpu.memory_space<vmem>>) attributes {dimension_semantics = [#tpu.dimension_semantics<parallel>, #tpu.dimension_semantics<parallel>], iteration_bounds = array<i64: 2, 1>, scalar_prefetch = 0 : i64, scratch_operands = 0 : i64, tpu.core_type = #tpu.core_type<tc>, window_params = [{pipeline_mode = #tpu.pipeline_mode<synchronous>, transform_indices = @transform_0, window_bounds = array<i64: 1, 4>}, {transform_indices = @transform_1, window_bounds = array<i64: 1>}, {transform_indices = @transform_2, window_bounds = array<i64: 1, 4, 256>}, {transform_indices = @transform_3, window_bounds = array<i64: 1, 1, 256>}]} {
    %c0 = arith.constant 0 : index
    %c0_0 = arith.constant 0 : index
    %0 = vector.load %arg2[%c0, %c0_0] : memref<1x4xf32, #tpu.memory_space<vmem>>, vector<1x4xf32>
    %c0_1 = arith.constant 0 : index
    %c0_2 = arith.constant 0 : index
    %c0_3 = arith.constant 0 : index
    %1 = vector.load %arg4[%c0_1, %c0_2, %c0_3] : memref<1x4x256xf32, #tpu.memory_space<vmem>>, vector<1x4x256xf32>
    %2 = vector.shape_cast %1 : vector<1x4x256xf32> to vector<4x256xf32>
    %cst = arith.constant dense<0.000000e+00> : vector<1x256xf32>
    %3 = tpu.matmul %0, %2, %cst {dimension_numbers = #tpu.dot_dimension_numbers<[1], [0], [0], [1], [0, 0, 1, 1], [], []>} : vector<1x4xf32>, vector<4x256xf32>, vector<1x256xf32> -> vector<1x256xf32>
    %c0_4 = arith.constant 0 : index
    %4 = memref.load %arg3[%c0_4] : memref<1xf32, #tpu.memory_space<smem>>
    %5 = vector.broadcast %4 : f32 to vector<1x256xf32>
    %6 = arith.addf %3, %5 : vector<1x256xf32>
    %7 = arith.negf %6 : vector<1x256xf32>
    %8 = math.exp %7 : vector<1x256xf32>
    %cst_5 = arith.constant 1.000000e+00 : f32
    %9 = vector.broadcast %cst_5 : f32 to vector<1x256xf32>
    %10 = arith.addf %9, %8 : vector<1x256xf32>
    %11 = arith.divf %9, %10 : vector<1x256xf32>
    %c0_6 = arith.constant 0 : index
    %c0_7 = arith.constant 0 : index
    %c0_8 = arith.constant 0 : index
    %12 = vector.load %arg5[%c0_6, %c0_7, %c0_8] : memref<1x1x256xf32, #tpu.memory_space<vmem>>, vector<1x1x256xf32>
    %13 = vector.shape_cast %12 : vector<1x1x256xf32> to vector<1x256xf32>
    %14 = vector.shape_cast %11 : vector<1x256xf32> to vector<1x1x256xf32>
    tpu.vector_store %arg5[%c0_6, %c0_7, %c0_8], %14 {strides = array<i32>} : memref<1x1x256xf32, #tpu.memory_space<vmem>>, vector<1x1x256xf32>,
    return
  }
  func.func @transform_0(%arg0: i32, %arg1: i32) -> (i32, i32) {
    %c0_i32 = arith.constant 0 : i32
    %c0_i32_0 = arith.constant 0 : i32
    %c0_i32_1 = arith.constant 0 : i32
    return %c0_i32, %c0_i32_0 : i32, i32
  }
  func.func @transform_1(%arg0: i32, %arg1: i32) -> i32 {
    %c0_i32 = arith.constant 0 : i32
    %c0_i32_0 = arith.constant 0 : i32
    return %c0_i32 : i32
  }
  func.func @transform_2(%arg0: i32, %arg1: i32) -> (i32, i32, i32) {
    %c0_i32 = arith.constant 0 : i32
    %c0_i32_0 = arith.constant 0 : i32
    return %arg0, %c0_i32, %arg1 : i32, i32, i32
  }
  func.func @transform_3(%arg0: i32, %arg1: i32) -> (i32, i32, i32) {
    %c0_i32 = arith.constant 0 : i32
    %c0_i32_0 = arith.constant 0 : i32
    return %arg0, %c0_i32, %arg1 : i32, i32, i32
  }
}

</mosaic_0001>

<bundles_post_ra>
// kernel: tpu_custom_call.1
= control target key start
LH: loop header
LB: loop body
LE: loop exit
PB: predicated region body
PF: predicated region fallthrough
CT: control target
= control target key end

     0   :  { %s775_s0 = inlined_call_operand.vmem [shape: f32[1,4], index: 0, kind: input, shape index: {}]   ;;  %s776_s1 = inlined_call_operand.<no memory space> [shape: f32[1], index: 1, kind: input, shape index: {}]   ;;  %s777_s2 = inlined_call_operand.hbm [shape: f32[2,4,256], index: 2, kind: input, shape index: {}]   ;;  %s778_s3 = inlined_call_operand.hbm [shape: f32[2,1,256], index: 3, kind: output, shape index: {}]  }
   0x1   :  { %8 = sst [smem:[#allocation2]] %s776_s1 }
   0x2   :  { %9 = vsyncpa [#allocation4], 0 }
   0x3   :  { %11 = vsyncpa [#allocation4 + $0x1], 0 }
   0x4   :  { %12 = vsyncpa [#allocation5], 0 }
   0x5   :  { %14 = vsyncpa [#allocation5 + $0x1], 0  ;;  %s645_s14 = smov 0   ;;  %s647_s15 = smov 0  }
   0x6   :  { %s649_s16 = smov 0   ;;  %s651_s17 = smov 0  }
   0x7   :  { %s653_s18 = smov 0   ;;  %s655_s19 = smov 0  }
   0x8 LB: > { %s417_s1 = sadd.s32 4294967295, %s620_s19   ;;  %s418_s20 = sadd.s32 4294967294, %s620_s19   ;;  %s620_s19 = sphi %s655_s19, %s20_s19   ;;  %s616_s18 = sphi %s653_s18, %s789_s18   ;;  %s612_s17 = sphi %s651_s17, %s788_s17   ;;  %s608_s16 = sphi %s649_s16, %s787_s16   ;;  %s604_s15 = sphi %s647_s15, %s786_s15   ;;  %s600_s14 = sphi %s645_s14, %s785_s14  }
   0x9   : > { %s32_s21 = sadd.s32 1, %s616_s18  ;;  %s83_s22 = sadd.s32 1, %s608_s16 }
   0xa   : > { %p34_p0 = scmp.ge.s32.totalorder %s32_s21, 2  ;;  %p90_p1 = scmp.ne.s32.totalorder %s608_s16, %s604_s15 }
   0xb   : > { %p91_p2 = scmp.eq.s32.totalorder %s620_s19, 0  ;;  %p96_p3 = scmp.ne.s32.totalorder %s604_s15, %s600_s14 }
   0xc   : > { %s791_s21 = smov (%p34_p0, %s32_s21), 0  ;;  %p97_p5 = scmp.eq.s32.totalorder %s417_s1, 0 }
   0xd   : > { %p686_p4 = por %p91_p2, %p90_p1  ;;  %s78_s24 = ssub.s32 %s616_s18, %s791_s21 }
   0xe   : > { %p122_p6 = scmp.eq.s32.totalorder %s417_s1, 1  ;;  %p81_p7 = scmp.eq.s32.totalorder %s78_s24, 0 }
   0xf   : > { %p692_p8 = por %p97_p5, %p96_p3  ;;  %p128_p10 = scmp.eq.s32.totalorder %s418_s20, 1 }
  0x10   : > { %p696_p9 = por %p122_p6, %p90_p1  ;;  %p420_p12 = scmp.ge.s32.totalorder %s620_s19, 2 }
  0x11   : > { %s701_s27 = scalar_select %p81_p7, %s608_s16, %s83_s22  }
  0x12   : > { %p703_p11 = por %p128_p10, %p96_p3  ;;  %p450_p13 = scmp.lt.s32.totalorder %s620_s19, 2 }
  0x13   : > { %s154_s29 = sand.u32 1, %s608_s16   ;;  %s437_s4 = sshll.u32 %s616_s18, 3 }
  0x14   : > { %s421_s30 = sshll.u32 %s154_s29, 3  ;;  %s165_s7 = scalar_lea.hbm %s777_s2, %s437_s4 }
  0x15   : > { %s158_s8 = scalar_lea.vmem [#allocation3], %s421_s30  ;;  %s167_s10 = sshll.u32 %s165_s7, 4  ;;  %s168_s10 = int_to_ptr.hbm [resolvable:$true] %s167_s10 }
  0x16   : > { %s169_s9 = sshll.u32 %s158_s8, 4  ;;  %p443_p0 = pnand %p450_p13, %p686_p4  ;;  %s170_s9 = int_to_ptr.vmem [resolvable:$true] %s169_s9 }
  0x17   : > { %p424_p1 = scmp.ge.s32.totalorder %s620_s19, 1  ;;  %p174_p2 = scmp.lt.s32.totalorder %s620_s19, 3 }
  0x18   : > { %s155_s11 = scalar_lea.sflag [#allocation4], %s154_s29 }
  0x19   : > { %445 = dma.hbm_to_vmem [thread:$0]  (!%p443_p0), %s168_s10, 128, %s170_s9, %s155_s11  }
  0x1a   : > { %p175_p3 = pnand %p424_p1, %p174_p2 }
  0x1b   : > { %s719_s12 = sand.u32 (!%p175_p3), 1, %s604_s15  }
  0x1c   : > { %178 = sbr.rel (%p175_p3) target bundleno = 207 (0xcf), region = 32  ;;  %s425_s13 = sshll.u32 (!%p175_p3), %s719_s12, 3 }
  0x1d   : > { %s181_s1 = scalar_lea.sflag (!%p175_p3), [#allocation4], %s719_s12  ;;  %s184_s20 = scalar_lea.vmem (!%p175_p3), [#allocation3], %s425_s13 }
  0x21   : > { %591 = dma.done.wait (%p692_p8), %s181_s1, 128  }
  0x22   : > { %593 = vsyncadd (%p692_p8), %s181_s1, 4294967168  ;;  %v211_v0 = vld [vmem:[%s184_s20] sm:$0xff]  ;;  %vm222_vm0 = vcmask 1043456   ;;  %v210_v1 = vld [vmem:[%s775_s0] sm:$0x1]  ;;  %vm218_vm1 = vcmask 31744   ;;  %v311_v30 = vlaneseq }
  0x23   : > { %215 = vst [vmem:[#allocation1] ss:$2 sm:$0xff] %v211_v0  ;;  %s212_s24 = sld [smem:[#allocation2]]  ;;  %s426_s25 = sshll.u32 %s719_s12, 1  ;;  %vm308_vm9 = vcmask 1040384  }
  0x24   : > { %s434_s29 = sshll.u32 %s612_s17, 1  ;;  %s207_s17 = scalar_lea.vmem [#allocation6], %s426_s25  ;;  %vm313_vm11 = vcmp.lt.s32.totalorder %v311_v30, 256 }
  0x25   : > { %s329_s5 = scalar_lea.hbm %s778_s3, %s434_s29  ;;  %s331_s6 = sshll.u32 %s207_s17, 4  ;;  %s332_s6 = int_to_ptr.vmem [resolvable:$true] %s331_s6 }
  0x26   : > { %s333_s7 = sshll.u32 %s329_s5, 4  ;;  %s317_s8 = scalar_lea.sflag [#allocation5], %s719_s12  ;;  %s334_s7 = int_to_ptr.hbm [resolvable:$true] %s333_s7 }
  0x27   : > { %s552_s9 = sshra.s32 %s334_s7, 4  ;;  %s558_s1 = scalar_lea.hbm %s778_s3, 4  ;;  %s553_s9 = int_to_ptr.hbm [resolvable:$true] %s552_s9 }
  0x28   : > { %s554_s10 = scalar_lea.hbm %s553_s9, 2  ;;  %p559_p7 = scmp.lt.s32.totalorder %s553_s9, %s778_s3 }
  0x29   : > { %v213_v4 = vstv %s212_s24  ;;  %p555_p4 = scmp.ne.s32.totalorder %s553_s9, %s554_s10  ;;  %p560_p8 = scmp.lt.s32.totalorder %s558_s1, %s554_s10 }
  0x2a   : > { %v216_v2 = vld.sshfl [vmem:[#allocation1] sm:$0xff pattern:$0x75316420]  ;;  %v217_v3 = vld.sshfl [vmem:[#allocation1 + $0x8] sm:$0xff pattern:$0x75316420] }
  0x2b   : > { %427 = vmatpush.msk.msra.mxu0 %vm222_vm0, %v216_v2  ;;  %429 = vmatpush.msk.msra.mxu1 %vm222_vm0, %v217_v3  ;;  %p556_p5 = pnand %p555_p4, %p696_p9  ;;  %p561_p10 = por %p560_p8, %p559_p7 }
  0x2c   : > { %428 = vmatmul.msk.f32.vlgmr.msra.gmra.mxu0 %vm218_vm1, %v210_v1  ;;  %430 = vmatmul.msk.f32.vlgmr.msra.gmra.mxu1 %vm218_vm1, %v210_v1 }
  0x2d   : > { %p557_p6 = pneg %p556_p5 }
  0x2f   : > { %p562_p13 = pnand %p561_p10, %p557_p6 }
  0xa9   : > { %v244_v5 = vpop.f32.mrf.mxu0  ;;  %v264_v6 = vpop.f32.mrf.mxu1 }
  0xaa   : > { %v245_v7 = vadd.f32 %v244_v5, %v213_v4  ;;  %v265_v8 = vadd.f32 %v264_v6, %v213_v4 }
  0xac   : > { %v431_v9 = vmul.f32 -1.442695, %v245_v7  ;;  %v432_v10 = vmul.f32 -1.442695, %v265_v8 }
  0xae   : > { %500 = vpow2.f32 %v431_v9 }
  0xaf   : > { %502 = vpow2.f32 %v432_v10 }
  0xb4   : > { %v501_v11 = vpop.eup %500 }
  0xb5   : > { %v503_v12 = vpop.eup %502  ;;  %v273_v13 = vadd.f32 1.0, %v501_v11 }
  0xb6   : > { %v274_v14 = vadd.f32 1.0, %v503_v12 }
  0xb7   : > { %504 = vrcp.f32 %v273_v13  ;;  %vm280_vm4 = vweird.f32 %v273_v13  ;;  %v286_v25 = vand.u32 2147483648, %v273_v13  ;;  %v284_v29 = vand.u32 2147483647, %v273_v13 }
  0xb8   : > { %506 = vrcp.f32 %v274_v14  ;;  %v301_v22 = vand.u32 2147483648, %v274_v14  ;;  %v299_v24 = vand.u32 2147483647, %v274_v14  ;;  %vm295_vm5 = vweird.f32 %v274_v14 }
  0xb9   : > { %v287_v34 = vor.u32 1.1754944e-38, %v286_v25  ;;  %vm285_vm10 = vcmp.eq.f32.partialorder %v284_v29, 8.507059e+37 }
  0xba   : > { %v302_v31 = vor.u32 1.1754944e-38, %v301_v22  ;;  %vm300_vm8 = vcmp.eq.f32.partialorder %v299_v24, 8.507059e+37 }
  0xbd   : > { %v505_v15 = vpop.eup %504 }
  0xbe   : > { %v507_v16 = vpop.eup %506  ;;  %v276_v17 = vmul.f32 %v505_v15, %v273_v13  ;;  %vm281_vm2 = vweird.f32 %v505_v15 }
  0xbf   : > { %v291_v18 = vmul.f32 %v507_v16, %v274_v14  ;;  %vm296_vm3 = vweird.f32 %v507_v16  ;;  %vm735_vm6 = vmor %vm280_vm4, %vm281_vm2 }
  0xc0   : > { %v277_v19 = vsub.f32 1.0, %v276_v17  ;;  %vm297_vm7 = vmor %vm295_vm5, %vm296_vm3 }
  0xc1   : > { %v292_v20 = vsub.f32 1.0, %v291_v18 }
  0xc2   : > { %v278_v21 = vmul.f32 %v505_v15, %v277_v19 }
  0xc3   : > { %v293_v23 = vmul.f32 %v507_v16, %v292_v20 }
  0xc4   : > { %v279_v26 = vadd.f32 %v505_v15, %v278_v21 }
  0xc5   : > { %v294_v27 = vadd.f32 %v507_v16, %v293_v23 }
  0xc6   : > { %v283_v32 = vsel %vm735_vm6, %v505_v15, %v279_v26 }
  0xc7   : > { %v298_v33 = vsel %vm297_vm7, %v507_v16, %v294_v27  ;;  %v288_v37 = vsel %vm285_vm10, %v287_v34, %v283_v32 }
  0xc8   : > { %v303_v35 = vsel %vm300_vm8, %v302_v31, %v298_v33 }
  0xc9   : > { %v307_v36 = vrot.slane %v303_v35, 7 }
  0xcb   : > { %v309_v38 = vsel %vm308_vm9, %v288_v37, %v307_v36 }
  0xcc   : > { %315 = vst.msk [vmem:[%s207_s17] sm:$0x3] %vm313_vm11, %v309_v38 }
  0xcd   : > { %565 = shalt.err (!%p562_p13)
}
  0xce   : > { %440 = dma.vmem_to_hbm [thread:$0]  (%p696_p9), %s332_s6, 32, %s334_s7, %s317_s8  }
  0xcf PF: > { %s345_s12 = sand.u32 1, %s600_s14   ;;  %p447_p0 = pnand %p420_p12, %p703_p11 }
  0xd0   : > { %s346_s23 = scalar_lea.sflag [#allocation5], %s345_s12 }
  0xd1   : > { %p448_p1 = pneg %p447_p0 }
  0xd3   : > { %595 = dma.done.wait (%p448_p1), %s346_s23, 32  }
  0xd4   : > { %597 = vsyncadd (%p448_p1), %s346_s23, 4294967264  ;;  %s20_s19 = sadd.s32 1, %s620_s19   ;;  %s785_s14 = smov %s604_s15 }
  0xd5   : > { %p17_p2 = scmp.ge.s32.totalorder %s20_s19, 4   ;;  %s786_s15 = smov %s608_s16 }
  0xd6   : > { %s787_s16 = smov %s701_s27  ;;  %s788_s17 = smov %s616_s18 }
  0xd7   : > { %s789_s18 = smov %s791_s21  ;;  %19 = sbr.rel (!%p17_p2) target bundleno = 8 (0x8), region = 77 }
  0xdc   :  { %352 = vsyncpa [#allocation4], 1 }
  0xdd   :  { %354 = vsyncpa [#allocation4 + $0x1], 1 }
  0xde   :  { %355 = vsyncpa [#allocation5], 1 }
  0xdf   :  { %357 = vsyncpa [#allocation5 + $0x1], 1 }

</bundles_post_ra>
